<compile_context>
chip_gen: v7x
topology: tpu7x:2x2x1
jax: 0.10.0
libtpu: 0.0.40
codegen_flags: <defaults>
</compile_context>

<pallas_src>
import functools

import jax
import jax.numpy as jnp
from jax import lax
from jax.experimental import pallas as pl
from jax.experimental.pallas import tpu as pltpu


def _location_mask_kernel(alpha_ref, out_ref, *, location_num, tk, tn, num_k,
                          bf16_operands):
    j0 = pl.program_id(1) * tn                      # output-column offset
    inv = jnp.float32(1.0 / location_num)           # trace-time constant

    # Scaled signed index difference for one (tk, tn) tile, hoisted out of the
    # K loop.  Per K step only add / abs / rsub remain on the VPU.
    d0 = (lax.broadcasted_iota(jnp.int32, (tk, tn), 0)
          - lax.broadcasted_iota(jnp.int32, (tk, tn), 1))
    e0 = d0.astype(jnp.float32) * inv

    def step(k, acc):
        # loc[i, j] = 1 - |(k*tk + i) - (j0 + j)| / location_num
        shift = (k * tk - j0).astype(jnp.float32) * inv
        loc = 1.0 - jnp.abs(e0 + shift)
        a_k = alpha_ref[k]                          # (tb, tk), resident in VMEM
        if bf16_operands:
            a_k = a_k.astype(jnp.bfloat16)
            loc = loc.astype(jnp.bfloat16)
        return acc + jnp.dot(a_k, loc, preferred_element_type=jnp.float32)

    acc = jnp.zeros((out_ref.shape[0], tn), jnp.float32)
    if num_k <= 8:
        for k in range(num_k):                      # static unroll (num_k is static)
            acc = step(k, acc)
    else:
        acc = lax.fori_loop(0, num_k, step, acc, unroll=2)

    out_ref[...] = acc.astype(out_ref.dtype)


def _round_up(x: int, m: int) -> int:
    return (x + m - 1) // m * m


def location_mask_layer(alpha: jax.Array,
                        location_num: int | None = None,
                        *,
                        bf16_operands: bool = False) -> jax.Array:
    """alpha: [B, N] -> [B, N] float32 (= alpha @ location_matrix)."""
    b, n = alpha.shape
    if location_num is None:
        location_num = n

    # Lane tile: multiple of 128, capped at 512, and when N > 128 chosen so the
    # output axis has >= 2 tiles (v7x megacore).  N is padded to a multiple of
    # the tile (padded alpha columns are zero, padded output columns sliced).
    n_128 = _round_up(n, 128)
    if n_128 <= 128:
        tn = 128
    else:
        tn = min(512, _round_up(n_128 // 2, 128))
    n_pad = _round_up(n, tn)
    tk = tn
    num_k = n_pad // tk

    # Batch tile: sublane-aligned; 256 rows when B is large enough to fill the
    # 256-wide MXUs of v6e/v7x.
    tb = 256 if b >= 256 else min(128, _round_up(b, 8))
    b_pad = _round_up(b, tb)

    alpha_p = jnp.zeros((b_pad, n_pad), jnp.float32)
    alpha_p = alpha_p.at[:b, :n].set(alpha.astype(jnp.float32))
    # K-chunk-leading layout so the kernel indexes chunk k along the first axis
    # (static or dynamic) instead of dynamically slicing the lane dimension.
    alpha3 = jnp.transpose(alpha_p.reshape(b_pad, num_k, tk), (1, 0, 2))

    grid = (b_pad // tb, n_pad // tn)
    kernel = functools.partial(
        _location_mask_kernel, location_num=location_num,
        tk=tk, tn=tn, num_k=num_k, bf16_operands=bf16_operands)

    out = pl.pallas_call(
        kernel,
        out_shape=jax.ShapeDtypeStruct((b_pad, n_pad), jnp.float32),
        grid=grid,
        in_specs=[pl.BlockSpec((num_k, tb, tk), lambda bi, ji: (0, bi, 0))],
        out_specs=pl.BlockSpec((tb, tn), lambda bi, ji: (bi, ji)),
        compiler_params=pltpu.CompilerParams(
            dimension_semantics=("parallel", "parallel")),
    )(alpha3)

    return out[:b, :n]


def _reference(alpha: jax.Array) -> jax.Array:
    n = alpha.shape[1]
    i = jnp.arange(n, dtype=jnp.float32)[:, None]
    j = jnp.arange(n, dtype=jnp.float32)[None, :]
    loc = 1.0 - jnp.abs(i - j) / n
    return jnp.dot(alpha, loc, precision=lax.Precision.HIGHEST)


if __name__ == "__main__":
    key = jax.random.PRNGKey(0)
    # (batch, location_num): the original toy shape plus a non-aligned larger
    # shape to exercise the padding / multi-tile / multi-K-chunk path.
    for batch, location_num in [(4, 8), (6, 300)]:
        key, sub = jax.random.split(key)
        alpha = jax.random.uniform(sub, (batch, location_num), dtype=jnp.float32)
        # Mimic attention weights (rows sum to 1), as in the HEAT model.
        alpha = alpha / jnp.sum(alpha, axis=-1, keepdims=True)

        out = location_mask_layer(alpha)
        jax.block_until_ready(out)

        ref = _reference(alpha)
        assert out.shape == (batch, location_num)
        assert jnp.allclose(out, ref, atol=1e-5, rtol=1e-4), (
            batch, location_num, float(jnp.max(jnp.abs(out - ref))))
    print("KERNEL_OK")
</pallas_src>

<mosaic_0001>
module attributes {stable_mosaic.version = 11 : i64} {
  func.func @_location_mask_kernel(%arg0: i32, %arg1: i32, %arg2: memref<1x8x128xf32, #tpu.memory_space<vmem>>, %arg3: memref<8x128xf32, #tpu.memory_space<vmem>>) attributes {dimension_semantics = [#tpu.dimension_semantics<parallel>, #tpu.dimension_semantics<parallel>], iteration_bounds = array<i64: 1, 1>, scalar_prefetch = 0 : i64, scratch_operands = 0 : i64, tpu.core_type = #tpu.core_type<tc>, window_params = [{transform_indices = @transform_0, window_bounds = array<i64: 1, 8, 128>}, {transform_indices = @transform_1, window_bounds = array<i64: 8, 128>}]} {
    %c128_i32 = arith.constant 128 : i32
    %0 = arith.muli %arg1, %c128_i32 : i32
    %1 = tpu.iota {dimensions = array<i32: 0>} : vector<128x128xi32>
    %2 = tpu.iota {dimensions = array<i32: 1>} : vector<128x128xi32>
    %3 = arith.subi %1, %2 : vector<128x128xi32>
    %4 = arith.sitofp %3 : vector<128x128xi32> to vector<128x128xf32>
    %cst = arith.constant 1.250000e-01 : f32
    %5 = vector.broadcast %cst : f32 to vector<128x128xf32>
    %6 = arith.mulf %4, %5 : vector<128x128xf32>
    %cst_0 = arith.constant 0.000000e+00 : f32
    %7 = vector.broadcast %cst_0 : f32 to vector<8x128xf32>
    %c0_i32 = arith.constant 0 : i32
    %8 = arith.subi %c0_i32, %0 : i32
    %9 = arith.sitofp %8 : i32 to f32
    %cst_1 = arith.constant 1.250000e-01 : f32
    %10 = arith.mulf %9, %cst_1 : f32
    %11 = vector.broadcast %10 : f32 to vector<128x128xf32>
    %12 = arith.addf %6, %11 : vector<128x128xf32>
    %13 = math.absf %12 : vector<128x128xf32>
    %cst_2 = arith.constant 1.000000e+00 : f32
    %14 = vector.broadcast %cst_2 : f32 to vector<128x128xf32>
    %15 = arith.subf %14, %13 : vector<128x128xf32>
    %c0 = arith.constant 0 : index
    %c0_3 = arith.constant 0 : index
    %c0_4 = arith.constant 0 : index
    %16 = vector.load %arg2[%c0, %c0_3, %c0_4] : memref<1x8x128xf32, #tpu.memory_space<vmem>>, vector<1x8x128xf32>
    %17 = vector.shape_cast %16 : vector<1x8x128xf32> to vector<8x128xf32>
    %cst_5 = arith.constant dense<0.000000e+00> : vector<8x128xf32>
    %18 = tpu.matmul %17, %15, %cst_5 {dimension_numbers = #tpu.dot_dimension_numbers<[1], [0], [0], [1], [0, 0, 1, 1], [], []>} : vector<8x128xf32>, vector<128x128xf32>, vector<8x128xf32> -> vector<8x128xf32>
    %19 = arith.addf %7, %18 : vector<8x128xf32>
    %c0_6 = arith.constant 0 : index
    %c0_7 = arith.constant 0 : index
    %20 = vector.load %arg3[%c0_6, %c0_7] : memref<8x128xf32, #tpu.memory_space<vmem>>, vector<8x128xf32>
    tpu.vector_store %arg3[%c0_6, %c0_7], %19 {strides = array<i32>} : memref<8x128xf32, #tpu.memory_space<vmem>>, vector<8x128xf32>,
    return
  }
  func.func @transform_0(%arg0: i32, %arg1: i32) -> (i32, i32, i32) {
    %c0_i32 = arith.constant 0 : i32
    %c0_i32_0 = arith.constant 0 : i32
    %c0_i32_1 = arith.constant 0 : i32
    return %c0_i32, %arg0, %c0_i32_0 : i32, i32, i32
  }
  func.func @transform_1(%arg0: i32, %arg1: i32) -> (i32, i32) {
    %c0_i32 = arith.constant 0 : i32
    return %arg0, %arg1 : i32, i32
  }
}

</mosaic_0001>

<bundles_post_ra>
// kernel: tpu_custom_call.1
= control target key start
LH: loop header
LB: loop body
LE: loop exit
PB: predicated region body
PF: predicated region fallthrough
CT: control target
= control target key end

     0   :  { %6 = vsyncpa [#allocation3], 0  ;;  %s440_s0 = inlined_call_operand.hbm [shape: f32[1,8,128], index: 0, kind: input, shape index: {}]   ;;  %s441_s1 = inlined_call_operand.hbm [shape: f32[8,128], index: 1, kind: output, shape index: {}]  }
   0x1   :  { %7 = vsyncpa [#allocation4], 0  ;;  %s357_s6 = smov [#allocation2]   ;;  %s309_s10 = scalar_lea.hbm %s440_s0, 128 }
   0x2   :  { %s14_s7 = sshll.u32 %s357_s6, 4  ;;  %p310_p0 = scmp.ne.s32.totalorder %s440_s0, %s309_s10  ;;  %s15_s7 = int_to_ptr.vmem [resolvable:$true] %s14_s7 }
   0x3   :  { %p313_p1 = scmp.lt.u32.totalorder %s309_s10, %s440_s0 }
   0x5   :  { %p315_p2 = pnand %p313_p1, %p310_p0 }
   0x7   :  { %318 = shalt.err (!%p315_p2)
}
   0x8   :  { %s319_s15 = scalar_lea.vmem %s15_s7, 128  ;;  %p324_p4 = scmp.lt.s32.totalorder %s15_s7, %s15_s7 }
   0x9   :  { %p320_p3 = scmp.ne.s32.totalorder %s15_s7, %s319_s15  ;;  %p325_p5 = scmp.lt.s32.totalorder %s319_s15, %s319_s15 }
   0xb   :  { %p326_p6 = por %p325_p5, %p324_p4 }
   0xd   :  { %p327_p7 = pnand %p326_p6, %p320_p3 }
   0xf   :  { %330 = shalt.err (!%p327_p7)
}
  0x10   :  { %17 = dma.hbm_to_vmem [thread:$0]  %s440_s0, 128, %s15_s7, [#allocation3]   ;;  %v22_v0 = vlaneseq }
  0x11   :  { %353 = dma.done.wait [#allocation3], 128  }
  0x12   :  { %354 = vsyncadd [#allocation3], 4294967168  ;;  %v358_v1 = vmov 0.0|0.0   ;;  %vm359_vm0 = vmmov 0   ;;  %v360_v2 = vmov 0.0   ;;  %v385_v3 = vshrl.u32 %v22_v0, 7 }
  0x13   :  { %280 = vmatprep.subr.bf16.mxu0 %v358_v1  ;;  %277 = vmatprep.mubr.msk.f32.mxu0 %vm359_vm0, %v360_v2  ;;  %v387_v4 = vand.u32 127, %v22_v0  ;;  %s361_s0 = smov [#allocation5]  }
  0x14   :  { %v24_v5 = vadd.s32 8, %v385_v3  ;;  %v25_v7 = vadd.s32 16, %v385_v3  ;;  %v26_v8 = vadd.s32 24, %v385_v3  ;;  %v27_v9 = vadd.s32 32, %v385_v3  ;;  %s219_s18 = sshll.u32 %s361_s0, 4  ;;  %s220_s18 = int_to_ptr.vmem [resolvable:$true] %s219_s18 }
  0x15   :  { %v41_v6 = vsub.s32 %v385_v3, %v387_v4  ;;  %v28_v10 = vadd.s32 40, %v385_v3  ;;  %v29_v11 = vadd.s32 48, %v385_v3  ;;  %v30_v12 = vadd.s32 56, %v385_v3  ;;  %s331_s19 = scalar_lea.vmem %s220_s18, 128  ;;  %p336_p9 = scmp.lt.s32.totalorder %s220_s18, %s220_s18 }
  0x16   :  { %v42_v13 = vsub.s32 %v24_v5, %v387_v4  ;;  %v43_v15 = vsub.s32 %v25_v7, %v387_v4  ;;  %v44_v16 = vsub.s32 %v26_v8, %v387_v4  ;;  %v45_v17 = vsub.s32 %v27_v9, %v387_v4  ;;  %p332_p8 = scmp.ne.s32.totalorder %s220_s18, %s331_s19  ;;  %p337_p10 = scmp.lt.s32.totalorder %s331_s19, %s331_s19 }
  0x17   :  { %v57_v14 = vcvt.s32.f32 %v41_v6  ;;  %v46_v18 = vsub.s32 %v28_v10, %v387_v4  ;;  %v47_v19 = vsub.s32 %v29_v11, %v387_v4  ;;  %v48_v20 = vsub.s32 %v30_v12, %v387_v4 }
  0x18   :  { %v58_v21 = vcvt.s32.f32 %v42_v13  ;;  %v59_v23 = vcvt.s32.f32 %v43_v15  ;;  %v60_v24 = vcvt.s32.f32 %v44_v16  ;;  %v61_v25 = vcvt.s32.f32 %v45_v17  ;;  %p338_p11 = por %p337_p10, %p336_p9 }
  0x19   :  { %v73_v22 = vmul.f32 0.125, %v57_v14  ;;  %v62_v26 = vcvt.s32.f32 %v46_v18  ;;  %v63_v27 = vcvt.s32.f32 %v47_v19  ;;  %v64_v28 = vcvt.s32.f32 %v48_v20 }
  0x1a   :  { %v74_v29 = vmul.f32 0.125, %v58_v21  ;;  %v75_v31 = vmul.f32 0.125, %v59_v23  ;;  %v76_v32 = vmul.f32 0.125, %v60_v24  ;;  %v77_v33 = vmul.f32 0.125, %v61_v25  ;;  %p339_p12 = pnand %p338_p11, %p332_p8 }
  0x1b   :  { %v109_v30 = vand.u32 2147483647, %v73_v22  ;;  %v78_v34 = vmul.f32 0.125, %v62_v26  ;;  %v79_v35 = vmul.f32 0.125, %v63_v27  ;;  %v80_v36 = vmul.f32 0.125, %v64_v28 }
  0x1c   :  { %v110_v37 = vand.u32 2147483647, %v74_v29  ;;  %v111_v39 = vand.u32 2147483647, %v75_v31  ;;  %v31_v40 = vadd.s32 64, %v385_v3  ;;  %v32_v51 = vadd.s32 72, %v385_v3 }
  0x1d   :  { %v125_v38 = vsub.f32 1.0, %v109_v30  ;;  %v112_v41 = vand.u32 2147483647, %v76_v32  ;;  %v113_v42 = vand.u32 2147483647, %v77_v33  ;;  %v33_v58 = vadd.s32 80, %v385_v3 }
  0x1e   :  { %v114_v43 = vand.u32 2147483647, %v78_v34  ;;  %v126_v44 = vsub.f32 1.0, %v110_v37  ;;  %v127_v45 = vsub.f32 1.0, %v111_v39  ;;  %v115_v46 = vand.u32 2147483647, %v79_v35 }
  0x1f   :  { %v116_v47 = vand.u32 2147483647, %v80_v36  ;;  %v128_v48 = vsub.f32 1.0, %v112_v41  ;;  %v129_v49 = vsub.f32 1.0, %v113_v42  ;;  %v49_v54 = vsub.s32 %v31_v40, %v387_v4 }
  0x20   :  { %v130_v50 = vsub.f32 1.0, %v114_v43  ;;  %v281_v52 = vpack.c.bf16 %v126_v44, %v125_v38  ;;  %v131_v53 = vsub.f32 1.0, %v115_v46  ;;  %v50_v57 = vsub.s32 %v32_v51, %v387_v4 }
  0x21   :  { %v284_v55 = vpack.c.bf16 %v128_v48, %v127_v45  ;;  %v132_v56 = vsub.f32 1.0, %v116_v47  ;;  %v65_v60 = vcvt.s32.f32 %v49_v54  ;;  %v34_v61 = vadd.s32 88, %v385_v3  ;;  %v141_v45 = vld [vmem:[#allocation2] sm:$0xff] }
  0x22   :  { %282 = vmatpush3.bf16.msra.mxu0 %v281_v52  ;;  %v287_v59 = vpack.c.bf16 %v130_v50, %v129_v49  ;;  %v35_v62 = vadd.s32 96, %v385_v3  ;;  %v66_v63 = vcvt.s32.f32 %v50_v57  ;;  %v51_v0 = vsub.s32 %v33_v58, %v387_v4 }
  0x23   :  { %283 = vmatprep.subr.bf16.mxu0 %v358_v1  ;;  %v36_v2 = vadd.s32 104, %v385_v3  ;;  %v37_v5 = vadd.s32 112, %v385_v3  ;;  %v81_v6 = vmul.f32 0.125, %v65_v60  ;;  %v52_v7 = vsub.s32 %v34_v61, %v387_v4 }
  0x24   :  { %v53_v8 = vsub.s32 %v35_v62, %v387_v4  ;;  %v38_v9 = vadd.s32 120, %v385_v3  ;;  %v82_v10 = vmul.f32 0.125, %v66_v63  ;;  %v67_v11 = vcvt.s32.f32 %v51_v0 }
  0x25   :  { %v54_v12 = vsub.s32 %v36_v2, %v387_v4  ;;  %v55_v13 = vsub.s32 %v37_v5, %v387_v4  ;;  %v117_v14 = vand.u32 2147483647, %v81_v6  ;;  %v68_v15 = vcvt.s32.f32 %v52_v7 }
  0x26   :  { %285 = vmatpush3.bf16.msra.mxu0 %v284_v55  ;;  %v69_v16 = vcvt.s32.f32 %v53_v8  ;;  %v56_v17 = vsub.s32 %v38_v9, %v387_v4  ;;  %v118_v18 = vand.u32 2147483647, %v82_v10  ;;  %v83_v19 = vmul.f32 0.125, %v67_v11 }
  0x27   :  { %286 = vmatprep.subr.bf16.mxu0 %v358_v1  ;;  %v70_v20 = vcvt.s32.f32 %v54_v12  ;;  %v290_v21 = vpack.c.bf16 %v132_v56, %v131_v53  ;;  %v84_v22 = vmul.f32 0.125, %v68_v15  ;;  %v133_v3 = vsub.f32 1.0, %v117_v14 }
  0x28   :  { %v85_v23 = vmul.f32 0.125, %v69_v16  ;;  %v71_v24 = vcvt.s32.f32 %v55_v13  ;;  %v72_v25 = vcvt.s32.f32 %v56_v17  ;;  %v134_v26 = vsub.f32 1.0, %v118_v18 }
  0x29   :  { %v119_v27 = vand.u32 2147483647, %v83_v19  ;;  %v120_v28 = vand.u32 2147483647, %v84_v22  ;;  %v86_v29 = vmul.f32 0.125, %v70_v20 }
  0x2a   :  { %288 = vmatpush3.bf16.msra.mxu0 %v287_v59  ;;  %v121_v30 = vand.u32 2147483647, %v85_v23  ;;  %v87_v4 = vmul.f32 0.125, %v71_v24  ;;  %v88_v31 = vmul.f32 0.125, %v72_v25  ;;  %v293_v32 = vpack.c.bf16 %v134_v26, %v133_v3 }
  0x2b   :  { %289 = vmatprep.subr.bf16.mxu0 %v358_v1  ;;  %v135_v33 = vsub.f32 1.0, %v119_v27  ;;  %v136_v34 = vsub.f32 1.0, %v120_v28  ;;  %v122_v35 = vand.u32 2147483647, %v86_v29 }
  0x2c   :  { %v123_v36 = vand.u32 2147483647, %v87_v4  ;;  %v137_v38 = vsub.f32 1.0, %v121_v30  ;;  %v124_v40 = vand.u32 2147483647, %v88_v31 }
  0x2d   :  { %v296_v37 = vpack.c.bf16 %v136_v34, %v135_v33  ;;  %v138_v39 = vsub.f32 1.0, %v122_v35 }
  0x2e   :  { %291 = vmatpush3.bf16.msra.mxu0 %v290_v21  ;;  %v139_v42 = vsub.f32 1.0, %v123_v36  ;;  %v140_v43 = vsub.f32 1.0, %v124_v40 }
  0x2f   :  { %292 = vmatprep.subr.bf16.mxu0 %v358_v1  ;;  %v299_v41 = vpack.c.bf16 %v138_v39, %v137_v38 }
  0x30   :  { %v302_v44 = vpack.c.bf16 %v140_v43, %v139_v42 }
  0x32   :  { %294 = vmatpush3.bf16.msra.mxu0 %v293_v32 }
  0x33   :  { %295 = vmatprep.subr.bf16.mxu0 %v358_v1 }
  0x36   :  { %297 = vmatpush3.bf16.msra.mxu0 %v296_v37 }
  0x37   :  { %298 = vmatprep.subr.bf16.mxu0 %v358_v1 }
  0x3a   :  { %300 = vmatpush3.bf16.msra.mxu0 %v299_v41 }
  0x3b   :  { %301 = vmatprep.subr.bf16.mxu0 %v358_v1 }
  0x3e   :  { %303 = vmatpush3.bf16.msra.mxu0 %v302_v44 }
  0x41   :  { %278 = vmatmul.mubr.f32.vlgmr.msra.gmra.mrb[0].mxu0 %v141_v45 }
 0x114   :  { %v208_v46 = vpop.f32.mrb[0].mxu0 }
 0x115   :  { %212 = vst [vmem:[#allocation5] sm:$0xff] %v208_v46  ;;  %v279_v47 = vpop.f32.mrb[1].mxu0 }
 0x116   :  { %342 = shalt.err (!%p339_p12)
}
 0x117   :  { %s343_s22 = scalar_lea.hbm %s441_s1, 128 }
 0x118   :  { %p344_p13 = scmp.ne.s32.totalorder %s441_s1, %s343_s22  ;;  %p347_p0 = scmp.lt.u32.totalorder %s343_s22, %s441_s1 }
 0x11a   :  { %p349_p1 = pnand %p347_p0, %p344_p13 }
 0x11c   :  { %352 = shalt.err (!%p349_p1)
}
 0x11d   :  { %222 = dma.vmem_to_hbm [thread:$0]  %s220_s18, 128, %s441_s1, [#allocation4]  }
 0x11e   :  { %355 = dma.done.wait [#allocation4], 128  }
 0x11f   :  { %356 = vsyncadd [#allocation4], 4294967168 }
 0x120   :  { %226 = vsyncpa [#allocation3], 1 }
 0x121   :  { %227 = vsyncpa [#allocation4], 1 }

</bundles_post_ra>
